<compile_context>
chip_gen: v6e
topology: v6e:2x2x1
jax: 0.10.0
libtpu: 0.0.40
codegen_flags: <defaults>
</compile_context>

<pallas_src>
import functools

import numpy as np
import jax
import jax.numpy as jnp
from jax.experimental import pallas as pl
from jax.experimental.pallas import tpu as pltpu


def _round_up(v, m):
    return (v + m - 1) // m * m


def _pow_gamma(q, gamma):
    """(1 - p)^gamma; unrolled multiplies for small integer gamma (avoids EUP pow)."""
    g = float(gamma)
    if g == int(g) and 0 <= int(g) <= 4:
        out = jnp.ones_like(q)
        for _ in range(int(g)):
            out = out * q
        return out
    return jnp.power(q, jnp.float32(g))


def _write_partial(out_ref, per_elem_sum_11):
    """Write the tile's partial sum into lane 0 of a lane-dense (1, 128) block."""
    lane = jax.lax.broadcasted_iota(jnp.int32, (1, 128), 1)
    out_ref[...] = jnp.where(lane == 0, per_elem_sum_11, 0.0)


def _focal_kernel_class_major(xt_ref, t_ref, a_ref, out_ref, *, gamma, n_total):
    # Small-C path: examples live on lanes.
    # xt_ref : (C, TILE_N) logits (native dtype)      VMEM
    # t_ref  : (1, TILE_N) int32 target class ids     VMEM (lane-dense)
    # a_ref  : (1, TILE_N) f32 alpha[target]          VMEM (lane-dense)
    # out_ref: (1, 128)    f32 per-tile partial sum   VMEM (own block per tile)
    i = pl.program_id(0)
    x = xt_ref[...].astype(jnp.float32)          # upcast in-register
    t = t_ref[...]
    a = a_ref[...]
    c, tn = x.shape

    lane = jax.lax.broadcasted_iota(jnp.int32, (1, tn), 1)
    valid = (i * tn + lane) < n_total            # mask padded columns

    cls = jax.lax.broadcasted_iota(jnp.int32, (c, tn), 0)
    onehot = cls == t                            # (C, TILE_N) one-hot of target

    m = jnp.max(x, axis=0, keepdims=True)                                 # (1, TILE_N)
    denom = jnp.sum(jnp.exp(x - m), axis=0, keepdims=True)                # (1, TILE_N)
    x_t = jnp.sum(jnp.where(onehot, x, 0.0), axis=0, keepdims=True)       # target logit
    log_p = (x_t - m) - jnp.log(denom)
    probs = jnp.exp(log_p)

    q = jnp.maximum(1.0 - probs, 0.0)            # clamp: fractional gamma stays NaN-free
    mod = _pow_gamma(q, gamma)

    per_ex = -a * mod * log_p
    per_ex = jnp.where(valid, per_ex, 0.0)       # true select -> padded NaNs cannot leak
    _write_partial(out_ref, jnp.sum(per_ex, keepdims=True))


def _focal_kernel_row_major(x_ref, t_ref, a_ref, out_ref, *, gamma, n_total):
    # Large-C path: classes live on lanes.
    # x_ref  : (TILE_N, C) logits (native dtype)      VMEM
    # t_ref  : (TILE_N, 1) int32 target class ids     VMEM
    # a_ref  : (TILE_N, 1) f32 alpha[target]          VMEM
    # out_ref: (1, 128)    f32 per-tile partial sum   VMEM
    # TODO(synk): make the targets/alpha side inputs lane-dense (1, TILE_N) once a
    # cheap, guaranteed-lowered lane->sublane relayout is available; for C >= 128
    # they are a small fraction of the logits traffic.
    i = pl.program_id(0)
    x = x_ref[...].astype(jnp.float32)
    t = t_ref[...]
    a = a_ref[...]
    tn, c = x.shape

    row = jax.lax.broadcasted_iota(jnp.int32, (tn, 1), 0)
    valid = (i * tn + row) < n_total

    col = jax.lax.broadcasted_iota(jnp.int32, (tn, c), 1)
    onehot = col == t

    m = jnp.max(x, axis=1, keepdims=True)
    denom = jnp.sum(jnp.exp(x - m), axis=1, keepdims=True)
    x_t = jnp.sum(jnp.where(onehot, x, 0.0), axis=1, keepdims=True)
    log_p = (x_t - m) - jnp.log(denom)
    probs = jnp.exp(log_p)

    q = jnp.maximum(1.0 - probs, 0.0)
    mod = _pow_gamma(q, gamma)

    per_row = -a * mod * log_p
    per_row = jnp.where(valid, per_row, 0.0)
    _write_partial(out_ref, jnp.sum(per_row, keepdims=True))


def focal_loss(inputs, targets, alpha=None, gamma=2.0, size_average=True,
               fp32_slab_bytes=2 * 1024 * 1024, class_major_max_c=64,
               vmem_limit_bytes=48 * 1024 * 1024):
    """Pallas TPU focal loss. inputs: (N, C) logits (any float dtype); targets: (N,) int."""
    n, c = inputs.shape
    if alpha is None:
        alpha_vec = jnp.ones((c,), dtype=jnp.float32)   # matches torch.ones(num_classes, 1)
    else:
        alpha_vec = jnp.asarray(alpha, dtype=jnp.float32).reshape(-1)
    tgt = targets.reshape(-1).astype(jnp.int32)
    alpha_t = alpha_vec[tgt]                            # (N,) per-example alpha (XLA gather)

    class_major = c <= class_major_max_c

    # Tile size: governed by the f32 working-slab byte budget (no artificial row cap);
    # intermediates are ~4-5 f32 tiles + double-buffered inputs, kept under vmem_limit.
    if class_major:
        c_pad = _round_up(max(c, 1), 8)                 # sublane padding of the (C, TILE_N) tile
        tile_n = fp32_slab_bytes // (c_pad * 4)
        tile_n = max(128, min(_round_up(n, 128), (tile_n // 128) * 128))
    else:
        tile_n = fp32_slab_bytes // (c * 4)
        tile_n = max(8, min(_round_up(n, 8), (tile_n // 8) * 8))

    num_tiles = (n + tile_n - 1) // tile_n
    n_pad = num_tiles * tile_n

    tgt_pad = jnp.pad(tgt, (0, n_pad - n))
    alpha_pad = jnp.pad(alpha_t, (0, n_pad - n))

    if class_major:
        x_in = inputs.T                                 # (C, N) class-major; examples -> lanes
        t_in = tgt_pad.reshape(1, n_pad)
        a_in = alpha_pad.reshape(1, n_pad)
        kernel = functools.partial(_focal_kernel_class_major,
                                   gamma=float(gamma), n_total=int(n))
        in_specs = [
            pl.BlockSpec((c, tile_n), lambda i: (0, i)),      # logits (class-major)
            pl.BlockSpec((1, tile_n), lambda i: (0, i)),      # targets (lane-dense)
            pl.BlockSpec((1, tile_n), lambda i: (0, i)),      # alpha[target] (lane-dense)
        ]
    else:
        x_in = inputs                                   # (N, C) row-major; classes -> lanes
        t_in = tgt_pad.reshape(n_pad, 1)
        a_in = alpha_pad.reshape(n_pad, 1)
        kernel = functools.partial(_focal_kernel_row_major,
                                   gamma=float(gamma), n_total=int(n))
        in_specs = [
            pl.BlockSpec((tile_n, c), lambda i: (i, 0)),
            pl.BlockSpec((tile_n, 1), lambda i: (i, 0)),
            pl.BlockSpec((tile_n, 1), lambda i: (i, 0)),
        ]

    partials = pl.pallas_call(
        kernel,
        grid=(num_tiles,),
        in_specs=in_specs,
        # Per-tile lane-dense partial sums -> no resident accumulator, no cross-iteration
        # dependence, so the batch axis is "parallel" (both TCs on v7x).
        out_specs=pl.BlockSpec((1, 128), lambda i: (0, i)),
        out_shape=jax.ShapeDtypeStruct((1, num_tiles * 128), jnp.float32),
        compiler_params=pltpu.CompilerParams(
            dimension_semantics=("parallel",),
            vmem_limit_bytes=int(vmem_limit_bytes),
        ),
    )(x_in, t_in, a_in)

    total = jnp.sum(partials)
    if size_average:
        return total / jnp.float32(n)
    return total


def class_balanced_alpha(beta, samples_per_cls, num_classes):
    """Init-time helper (host-side numpy), mirrors FocalLoss.class_balanced_alpha."""
    effective_num = 1.0 - np.power(beta, samples_per_cls)
    weights = (1.0 - beta) / np.array(effective_num)
    weights = weights / np.sum(weights) * num_classes
    return jnp.asarray(weights, dtype=jnp.float32)


def _focal_loss_ref(inputs, targets, alpha, gamma=2.0, size_average=True):
    """Pure-JAX reference mirroring the PyTorch forward, for sanity checking."""
    p = jax.nn.softmax(inputs.astype(jnp.float32), axis=1)
    probs = jnp.take_along_axis(p, targets.reshape(-1, 1), axis=1)
    a = jnp.asarray(alpha, jnp.float32).reshape(-1)[targets].reshape(-1, 1)
    log_p = jnp.log(probs)
    batch_loss = -a * jnp.power(1.0 - probs, gamma) * log_p
    return jnp.mean(batch_loss) if size_average else jnp.sum(batch_loss)


if __name__ == "__main__":
    key = jax.random.PRNGKey(0)
    ks = jax.random.split(key, 12)

    # Case 1: module defaults (num_classes=3, gamma=2, mean) -> class-major path.
    n1, c1 = 8, 3
    x1 = jax.random.normal(ks[0], (n1, c1), dtype=jnp.float32)
    t1 = jax.random.randint(ks[1], (n1,), 0, c1, dtype=jnp.int32)
    a1 = jnp.ones((c1,), dtype=jnp.float32)
    out1 = jax.block_until_ready(focal_loss(x1, t1, alpha=a1, gamma=2, size_average=True))
    ref1 = _focal_loss_ref(x1, t1, a1, gamma=2, size_average=True)
    assert jnp.allclose(out1, ref1, rtol=1e-5, atol=1e-6), (out1, ref1)

    # Case 2: bf16 inputs (upcast in-kernel), class-balanced alpha, sum reduction.
    n2, c2 = 37, 5
    x2 = jax.random.normal(ks[2], (n2, c2), dtype=jnp.float32).astype(jnp.bfloat16)
    t2 = jax.random.randint(ks[3], (n2,), 0, c2, dtype=jnp.int32)
    a2 = class_balanced_alpha(0.999, [10, 4, 7, 2, 9], c2)
    out2 = jax.block_until_ready(focal_loss(x2, t2, alpha=a2, gamma=2, size_average=False))
    ref2 = _focal_loss_ref(x2.astype(jnp.float32), t2, a2, gamma=2, size_average=False)
    assert jnp.allclose(out2, ref2, rtol=1e-4, atol=1e-4), (out2, ref2)

    # Case 3: fractional gamma (jnp.power path), mean reduction.
    n3, c3 = 16, 4
    x3 = jax.random.normal(ks[4], (n3, c3), dtype=jnp.float32)
    t3 = jax.random.randint(ks[5], (n3,), 0, c3, dtype=jnp.int32)
    a3 = jnp.ones((c3,), dtype=jnp.float32)
    out3 = jax.block_until_ready(focal_loss(x3, t3, alpha=a3, gamma=1.5, size_average=True))
    ref3 = _focal_loss_ref(x3, t3, a3, gamma=1.5, size_average=True)
    assert jnp.allclose(out3, ref3, rtol=1e-5, atol=1e-6), (out3, ref3)

    # Case 4: class-major path with multiple tiles + padded last tile (tiny slab to force it).
    n4, c4 = 300, 3
    x4 = jax.random.normal(ks[6], (n4, c4), dtype=jnp.float32)
    t4 = jax.random.randint(ks[7], (n4,), 0, c4, dtype=jnp.int32)
    a4 = jnp.ones((c4,), dtype=jnp.float32)
    out4 = jax.block_until_ready(
        focal_loss(x4, t4, alpha=a4, gamma=2, size_average=True, fp32_slab_bytes=8 * 1024))
    ref4 = _focal_loss_ref(x4, t4, a4, gamma=2, size_average=True)
    assert jnp.allclose(out4, ref4, rtol=1e-5, atol=1e-6), (out4, ref4)

    # Case 5: large-C row-major path, multiple tiles + padded last tile, sum reduction.
    n5, c5 = 100, 80
    x5 = jax.random.normal(ks[8], (n5, c5), dtype=jnp.float32)
    t5 = jax.random.randint(ks[9], (n5,), 0, c5, dtype=jnp.int32)
    a5 = jnp.ones((c5,), dtype=jnp.float32)
    out5 = jax.block_until_ready(
        focal_loss(x5, t5, alpha=a5, gamma=2, size_average=False, fp32_slab_bytes=4 * 1024))
    ref5 = _focal_loss_ref(x5, t5, a5, gamma=2, size_average=False)
    assert jnp.allclose(out5, ref5, rtol=1e-5, atol=1e-5), (out5, ref5)

    # Case 6: large-C row-major path, bf16 inputs, single tile, mean reduction.
    n6, c6 = 64, 160
    x6 = jax.random.normal(ks[10], (n6, c6), dtype=jnp.float32).astype(jnp.bfloat16)
    t6 = jax.random.randint(ks[11], (n6,), 0, c6, dtype=jnp.int32)
    a6 = jnp.ones((c6,), dtype=jnp.float32)
    out6 = jax.block_until_ready(focal_loss(x6, t6, alpha=a6, gamma=2, size_average=True))
    ref6 = _focal_loss_ref(x6.astype(jnp.float32), t6, a6, gamma=2, size_average=True)
    assert jnp.allclose(out6, ref6, rtol=1e-4, atol=1e-4), (out6, ref6)

    print("KERNEL_OK")
</pallas_src>

<mosaic_0001>
module attributes {stable_mosaic.version = 11 : i64} {
  func.func @_focal_kernel_class_major(%arg0: i32, %arg1: memref<3x128xf32, #tpu.memory_space<vmem>>, %arg2: memref<1x128xi32, #tpu.memory_space<vmem>>, %arg3: memref<1x128xf32, #tpu.memory_space<vmem>>, %arg4: memref<1x128xf32, #tpu.memory_space<vmem>>) attributes {dimension_semantics = [#tpu.dimension_semantics<parallel>], iteration_bounds = array<i64: 1>, scalar_prefetch = 0 : i64, scratch_operands = 0 : i64, tpu.core_type = #tpu.core_type<tc>, window_params = [{transform_indices = @transform_0, window_bounds = array<i64: 3, 128>}, {transform_indices = @transform_1, window_bounds = array<i64: 1, 128>}, {transform_indices = @transform_2, window_bounds = array<i64: 1, 128>}, {transform_indices = @transform_3, window_bounds = array<i64: 1, 128>}]} {
    %c0 = arith.constant 0 : index
    %c0_0 = arith.constant 0 : index
    %0 = vector.load %arg1[%c0, %c0_0] : memref<3x128xf32, #tpu.memory_space<vmem>>, vector<3x128xf32>
    %c0_1 = arith.constant 0 : index
    %c0_2 = arith.constant 0 : index
    %1 = vector.load %arg2[%c0_1, %c0_2] : memref<1x128xi32, #tpu.memory_space<vmem>>, vector<1x128xi32>
    %c0_3 = arith.constant 0 : index
    %c0_4 = arith.constant 0 : index
    %2 = vector.load %arg3[%c0_3, %c0_4] : memref<1x128xf32, #tpu.memory_space<vmem>>, vector<1x128xf32>
    %3 = tpu.iota {dimensions = array<i32: 1>} : vector<1x128xi32>
    %c128_i32 = arith.constant 128 : i32
    %4 = arith.muli %arg0, %c128_i32 : i32
    %5 = vector.broadcast %4 : i32 to vector<1x128xi32>
    %6 = arith.addi %5, %3 : vector<1x128xi32>
    %c8_i32 = arith.constant 8 : i32
    %7 = vector.broadcast %c8_i32 : i32 to vector<1x128xi32>
    %8 = arith.cmpi slt, %6, %7 : vector<1x128xi32>
    %9 = tpu.iota {dimensions = array<i32: 0>} : vector<3x128xi32>
    %10 = vector.broadcast %1 : vector<1x128xi32> to vector<3x128xi32>
    %11 = arith.cmpi eq, %9, %10 : vector<3x128xi32>
    %cst = arith.constant dense<0xFF800000> : vector<128xf32>
    %12 = vector.multi_reduction <maximumf>, %0, %cst [0] : vector<3x128xf32> to vector<128xf32>
    %13 = vector.shape_cast %12 : vector<128xf32> to vector<1x128xf32>
    %14 = vector.broadcast %13 : vector<1x128xf32> to vector<3x128xf32>
    %15 = arith.subf %0, %14 : vector<3x128xf32>
    %16 = math.exp %15 : vector<3x128xf32>
    %cst_5 = arith.constant dense<0.000000e+00> : vector<128xf32>
    %17 = vector.multi_reduction <add>, %16, %cst_5 [0] : vector<3x128xf32> to vector<128xf32>
    %18 = vector.shape_cast %17 : vector<128xf32> to vector<1x128xf32>
    %cst_6 = arith.constant 0.000000e+00 : f32
    %19 = vector.broadcast %cst_6 : f32 to vector<3x128xf32>
    %20 = arith.select %11, %0, %19 : vector<3x128xi1>, vector<3x128xf32>
    %cst_7 = arith.constant dense<0.000000e+00> : vector<128xf32>
    %21 = vector.multi_reduction <add>, %20, %cst_7 [0] : vector<3x128xf32> to vector<128xf32>
    %22 = vector.shape_cast %21 : vector<128xf32> to vector<1x128xf32>
    %23 = arith.subf %22, %13 : vector<1x128xf32>
    %24 = math.log %18 : vector<1x128xf32>
    %25 = arith.subf %23, %24 : vector<1x128xf32>
    %26 = math.exp %25 : vector<1x128xf32>
    %cst_8 = arith.constant 1.000000e+00 : f32
    %27 = vector.broadcast %cst_8 : f32 to vector<1x128xf32>
    %28 = arith.subf %27, %26 : vector<1x128xf32>
    %cst_9 = arith.constant 0.000000e+00 : f32
    %29 = vector.broadcast %cst_9 : f32 to vector<1x128xf32>
    %30 = arith.maximumf %28, %29 : vector<1x128xf32>
    %cst_10 = arith.constant 1.000000e+00 : f32
    %31 = vector.broadcast %cst_10 : f32 to vector<1x128xf32>
    %32 = arith.mulf %31, %30 : vector<1x128xf32>
    %33 = arith.mulf %32, %30 : vector<1x128xf32>
    %cst_11 = arith.constant 0.000000e+00 : f32
    %34 = vector.broadcast %cst_11 : f32 to vector<1x128xf32>
    %35 = arith.subf %34, %2 : vector<1x128xf32>
    %36 = arith.mulf %35, %33 : vector<1x128xf32>
    %37 = arith.mulf %36, %25 : vector<1x128xf32>
    %cst_12 = arith.constant 0.000000e+00 : f32
    %38 = vector.broadcast %cst_12 : f32 to vector<1x128xf32>
    %39 = arith.select %8, %37, %38 : vector<1x128xi1>, vector<1x128xf32>
    %40 = vector.shape_cast %39 : vector<1x128xf32> to vector<1x1x128xf32>
    %cst_13 = arith.constant dense<0.000000e+00> : vector<1xf32>
    %41 = vector.multi_reduction <add>, %40, %cst_13 [1, 2] : vector<1x1x128xf32> to vector<1xf32>
    %42 = vector.shape_cast %41 : vector<1xf32> to vector<1x1x1xf32>
    %43 = vector.extract %42[0, 0, 0] : f32 from vector<1x1x1xf32>
    %44 = vector.broadcast %43 : f32 to vector<1x1xf32>
    %45 = tpu.iota {dimensions = array<i32: 1>} : vector<1x128xi32>
    %c0_i32 = arith.constant 0 : i32
    %46 = vector.broadcast %c0_i32 : i32 to vector<1x128xi32>
    %47 = arith.cmpi eq, %45, %46 : vector<1x128xi32>
    %cst_14 = arith.constant 0.000000e+00 : f32
    %48 = vector.shape_cast %44 : vector<1x1xf32> to vector<1x1xf32>
    %49 = vector.broadcast %48 : vector<1x1xf32> to vector<1x128xf32>
    %50 = vector.broadcast %cst_14 : f32 to vector<1x128xf32>
    %51 = arith.select %47, %49, %50 : vector<1x128xi1>, vector<1x128xf32>
    %c0_15 = arith.constant 0 : index
    %c0_16 = arith.constant 0 : index
    %52 = vector.load %arg4[%c0_15, %c0_16] : memref<1x128xf32, #tpu.memory_space<vmem>>, vector<1x128xf32>
    tpu.vector_store %arg4[%c0_15, %c0_16], %51 {strides = array<i32>} : memref<1x128xf32, #tpu.memory_space<vmem>>, vector<1x128xf32>,
    return
  }
  func.func @transform_0(%arg0: i32) -> (i32, i32) {
    %c0_i32 = arith.constant 0 : i32
    %c0_i32_0 = arith.constant 0 : i32
    return %c0_i32, %arg0 : i32, i32
  }
  func.func @transform_1(%arg0: i32) -> (i32, i32) {
    %c0_i32 = arith.constant 0 : i32
    %c0_i32_0 = arith.constant 0 : i32
    return %c0_i32, %arg0 : i32, i32
  }
  func.func @transform_2(%arg0: i32) -> (i32, i32) {
    %c0_i32 = arith.constant 0 : i32
    %c0_i32_0 = arith.constant 0 : i32
    return %c0_i32, %arg0 : i32, i32
  }
  func.func @transform_3(%arg0: i32) -> (i32, i32) {
    %c0_i32 = arith.constant 0 : i32
    %c0_i32_0 = arith.constant 0 : i32
    return %c0_i32, %arg0 : i32, i32
  }
}

</mosaic_0001>

<bundles_post_ra>
// kernel: tpu_custom_call.1
= control target key start
LH: loop header
LB: loop body
LE: loop exit
PB: predicated region body
PF: predicated region fallthrough
CT: control target
= control target key end

     0   :  { %8 = vsyncpa [#allocation3], 0  ;;  %s204_s0 = inlined_call_operand.hbm [shape: f32[3,8], index: 0, kind: input, shape index: {}]   ;;  %s205_s1 = inlined_call_operand.vmem [shape: s32[1,128], index: 1, kind: input, shape index: {}]   ;;  %s206_s2 = inlined_call_operand.vmem [shape: f32[1,128], index: 2, kind: input, shape index: {}]   ;;  %s207_s3 = inlined_call_operand.hbm [shape: f32[1,128], index: 3, kind: output, shape index: {}]  }
   0x1   :  { %9 = vsyncpa [#allocation4], 0  ;;  %s167_s12 = smov [#allocation2]  }
   0x2   :  { %s16_s13 = sshll.u32 %s167_s12, 4  ;;  %s17_s13 = int_to_ptr.vmem [resolvable:$true] %s16_s13 }
   0x3   :  { %s131_s14 = scalar_lea.vmem %s17_s13, 64  ;;  %p136_p1 = scmp.lt.s32.totalorder %s17_s13, %s17_s13 }
   0x4   :  { %p132_p0 = scmp.ne.s32.totalorder %s17_s13, %s131_s14  ;;  %p137_p2 = scmp.lt.s32.totalorder %s131_s14, %s131_s14 }
   0x6   :  { %p138_p3 = por %p137_p2, %p136_p1 }
   0x8   :  { %p139_p4 = pnand %p138_p3, %p132_p0 }
   0xa   :  { %142 = shalt.err (!%p139_p4)
}
   0xb   :  { %19 = dma.hbm_to_vmem [thread:$0]  %s204_s0, 64, %s17_s13, [#allocation3]  }
   0xc   :  { %163 = dma.done.wait [#allocation3], 64  }
   0xd   :  { %164 = vsyncadd [#allocation3], 4294967232  ;;  %vm43_vm0 = vcmask 1042432   ;;  %v27_v0 = vld [vmem:[#allocation2] sm:$0x7]  ;;  %v30_v9 = vlaneseq  ;;  %vm82_vm3 = vcmask 1040384  }
   0xe   :  { %v44_v1 = vsel %vm43_vm0, %v27_v0, -inf  ;;  %v112_v12 = vld [vmem:[%s205_s1] ss:$0 sm:$0xff] }
   0xf   :  { %v45_v2 = vrot.slane %v44_v1, 4  ;;  %v37_v11 = vshrl.u32 %v30_v9, 7  ;;  %v29_v35 = vld [vmem:[%s206_s2] sm:$0x1]  ;;  %v31_v39 = vand.u32 127, %v30_v9  ;;  %s168_s2 = smov [#allocation5]  }
  0x10   :  { %v78_v38 = vsub.f32 0.0, %v29_v35  ;;  %s103_s19 = sshll.u32 %s168_s2, 4  ;;  %s104_s19 = int_to_ptr.vmem [resolvable:$true] %s103_s19 }
  0x11   :  { %v46_v3 = vmax.f32 %v44_v1, %v45_v2  ;;  %vm42_vm1 = vcmp.eq.s32.totalorder %v37_v11, %v112_v12  ;;  %vm35_vm2 = vcmp.lt.s32.totalorder %v31_v39, 8  ;;  %vm93_vm4 = vcmp.eq.s32.totalorder %v31_v39, 0  ;;  %s143_s21 = scalar_lea.vmem %s104_s19, 16  ;;  %s147_s22 = scalar_lea.vmem %s104_s19, 32 }
  0x12   :  { %v61_v13 = vsel %vm42_vm1, %v27_v0, 0.0  ;;  %p144_p5 = scmp.ne.s32.totalorder %s104_s19, %s143_s21  ;;  %p148_p6 = scmp.lt.s32.totalorder %s104_s19, %s104_s19 }
  0x13   :  { %v47_v4 = vrot.slane %v46_v3, 2  ;;  %v62_v14 = vsel %vm43_vm0, %v61_v13, 0.0  ;;  %p149_p7 = scmp.lt.s32.totalorder %s147_s22, %s143_s21 }
  0x14   :  { %v63_v18 = vrot.slane %v62_v14, 4 }
  0x15   :  { %v48_v5 = vmax.f32 %v46_v3, %v47_v4  ;;  %p150_p8 = por %p149_p7, %p148_p6 }
  0x16   :  { %v64_v21 = vadd.f32 %v63_v18, %v62_v14 }
  0x17   :  { %v49_v6 = vrot.slane %v48_v5, 1  ;;  %p151_p9 = pnand %p150_p8, %p144_p5 }
  0x18   :  { %v65_v24 = vrot.slane %v64_v21, 2 }
  0x19   :  { %v50_v7 = vmax.f32 %v48_v5, %v49_v6 }
  0x1a   :  { %v66_v26 = vadd.f32 %v65_v24, %v64_v21 }
  0x1b   :  { %v51_v8 = vsub.f32 %v27_v0, %v50_v7 }
  0x1c   :  { %v67_v27 = vrot.slane %v66_v26, 1 }
  0x1d   :  { %v52_v10 = vmul.f32 1.442695, %v51_v8 }
  0x1e   :  { %v68_v28 = vadd.f32 %v67_v27, %v66_v26 }
  0x1f   :  { %117 = vpow2.f32 %v52_v10 }
  0x20   :  { %v69_v29 = vsub.f32 %v68_v28, %v50_v7 }
  0x2c   :  { %v118_v15 = vpop.eup %117 }
  0x2d   :  { %v54_v16 = vsel %vm43_vm0, %v118_v15, 0.0 }
  0x2e   :  { %v55_v17 = vrot.slane %v54_v16, 4 }
  0x30   :  { %v56_v19 = vadd.f32 %v55_v17, %v54_v16 }
  0x32   :  { %v57_v20 = vrot.slane %v56_v19, 2 }
  0x34   :  { %v58_v22 = vadd.f32 %v57_v20, %v56_v19 }
  0x36   :  { %v59_v23 = vrot.slane %v58_v22, 1 }
  0x38   :  { %v60_v25 = vadd.f32 %v59_v23, %v58_v22 }
  0x3a   :  { %119 = vlog2.f32 %v60_v25 }
  0x47   :  { %v120_v30 = vpop.eup %119 }
  0x48   :  { %v71_v31 = vmul.f32 0.6931472, %v120_v30 }
  0x4a   :  { %v72_v32 = vsub.f32 %v69_v29, %v71_v31 }
  0x4c   :  { %v73_v33 = vmul.f32 1.442695, %v72_v32 }
  0x4e   :  { %121 = vpow2.f32 %v73_v33 }
  0x5b   :  { %v122_v34 = vpop.eup %121 }
  0x5c   :  { %v75_v36 = vsub.f32 1.0, %v122_v34 }
  0x5e   :  { %v76_v37 = vmax.f32 %v75_v36, 0.0 }
  0x60   :  { %v77_v40 = vmul.f32 %v76_v37, %v76_v37 }
  0x62   :  { %v79_v41 = vmul.f32 %v78_v38, %v77_v40 }
  0x64   :  { %v80_v42 = vmul.f32 %v79_v41, %v72_v32 }
  0x66   :  { %v81_v43 = vsel %vm35_vm2, %v80_v42, 0.0 }
  0x67   :  { %v83_v44 = vsel %vm82_vm3, %v81_v43, 0.0 }
  0x68   :  { %84 = vadd.xlane.f32.xlu0 %v83_v44 }
  0xf1   :  { %v85_v45 = vpop.xlane.xlu0 %84 }
  0xf2   :  { %v86_v46 = vrot.slane %v85_v45, 4 }
  0xf4   :  { %v87_v47 = vadd.f32 %v86_v46, %v85_v45 }
  0xf6   :  { %v88_v48 = vrot.slane %v87_v47, 2 }
  0xf8   :  { %v89_v49 = vadd.f32 %v88_v48, %v87_v47 }
  0xfa   :  { %v90_v50 = vrot.slane %v89_v49, 1 }
  0xfc   :  { %v91_v51 = vadd.f32 %v90_v50, %v89_v49 }
  0xfe   :  { %113 = vpush %v91_v51 }
 0x12f   :  { %s114_s20 = spop %113 }
 0x130   :  { %v94_v52 = vstv %s114_s20 }
 0x131   :  { %v95_v53 = vsel %vm93_vm4, %v94_v52, 0.0 }
 0x132   :  { %96 = vst [vmem:[#allocation5] sm:$0x1] %v95_v53 }
 0x133   :  { %154 = shalt.err (!%p151_p9)
}
 0x134   :  { %106 = dma.vmem_to_hbm [thread:$0]  %s104_s19, 16, %s207_s3, [#allocation4]  }
 0x135   :  { %165 = dma.done.wait [#allocation4], 16  }
 0x136   :  { %166 = vsyncadd [#allocation4], 4294967280 }
 0x137   :  { %110 = vsyncpa [#allocation3], 1 }
 0x138   :  { %111 = vsyncpa [#allocation4], 1 }

</bundles_post_ra>
